<compile_context>
chip_gen: v7x
topology: tpu7x:2x2x1
jax: 0.10.0
libtpu: 0.0.40
codegen_flags: <defaults>
</compile_context>

<pallas_src>
import functools
import warnings

import numpy as np
import jax
import jax.numpy as jnp
from jax.experimental import pallas as pl
from jax.experimental.pallas import tpu as pltpu

KERNEL_SET = (2, 3, 6, 7)
TAPS = KERNEL_SET[-1]              # unified tap grid (the longest kernel)
_BF16_SUBLANE = 16                 # packed sublane tile for the bf16 scratch bands


def _round_up(v, m):
    return (v + m - 1) // m * m


def _dilated_inception_kernel(x_ref, w_ref, b_ref, o_ref, xt_ref, *,
                              dilation, W, cin, cin_pad):
    """One grid step: one batch element x one block of H rows (L = Hb*W lanes).

    x_ref : (1, cin, L)                 native (f32) activation block
    w_ref : (cout_total, TAPS*cin_pad)  bf16 merged weight (zero-padded columns)
    b_ref : (cout_total, 1)             f32 bias
    o_ref : (1, cout_total, L)          output block (bf16 store, lane-dense)
    xt_ref: (TAPS*cin_pad, L)           bf16 im2col scratch, tile-aligned bands
    """
    x = x_ref[0]                                        # (cin, L) f32
    L = x.shape[-1]

    # Pad channels up to the bf16 sublane tile ONCE so every band store below is
    # a full, aligned tile store and the scratch never holds uninitialised rows.
    if cin_pad > cin:
        x = jnp.concatenate(
            [x, jnp.zeros((cin_pad - cin, L), x.dtype)], axis=0)

    zero_band = jnp.zeros_like(x)                       # hoisted, shared by all taps
    # Within-row time index of every flattened (h, w) lane; blocks start on a
    # row boundary, so lane f has column t_idx = f % W.
    t_idx = jax.lax.broadcasted_iota(jnp.int32, (1, L), 1) % W

    for p in range(TAPS):
        s = (TAPS - 1 - p) * dilation                   # causal look-back of tap p
        if s == 0:
            band = x
        elif s >= W:
            # Look-back always crosses the per-row causal pad: tap is all zero.
            band = zero_band
        else:
            # roll puts x[f - s] at lane f (XLU slot, separate from the VPU/vst
            # path); lanes with t_idx < s -- which include every wrapped lane --
            # correspond to causal padding and are zeroed by the select.
            rolled = pltpu.roll(x, shift=s, axis=1)
            band = jnp.where(t_idx >= s, rolled, zero_band)
        # Full (cin_pad, L) aligned band store; the bf16 cast happens here.
        xt_ref[p * cin_pad:(p + 1) * cin_pad, :] = band.astype(xt_ref.dtype)

    # Single fused MXU matmul for all branches / taps, f32 accumulation.
    acc = jnp.dot(w_ref[...], xt_ref[...], preferred_element_type=jnp.float32)
    o_ref[0, :, :] = (acc + b_ref[...]).astype(o_ref.dtype)


def merge_params(weights, biases, cin, weight_dtype=jnp.bfloat16):
    """Hoisted out of the forward path (call once at init): merge the 4 branch
    convs into one (cout_total, TAPS*cin_pad) weight with tap-major, sublane-
    tile-aligned columns (unused taps / padded channels are zero)."""
    cout_per = weights[0].shape[0]
    cout_total = cout_per * len(KERNEL_SET)
    cin_pad = _round_up(cin, _BF16_SUBLANE)

    wm = np.zeros((cout_total, TAPS, cin_pad), np.float32)
    for i, (w, k) in enumerate(zip(weights, KERNEL_SET)):
        w = np.asarray(w, np.float32)                   # (cout_per, cin, k)
        # tap j of kernel k has look-back (k-1-j)*dilation -> global tap TAPS-k+j
        wm[i * cout_per:(i + 1) * cout_per, TAPS - k:TAPS, :cin] = \
            np.transpose(w, (0, 2, 1))
    wm = jnp.asarray(wm.reshape(cout_total, TAPS * cin_pad), dtype=weight_dtype)
    bias = jnp.asarray(
        np.concatenate([np.asarray(b, np.float32) for b in biases]
                       ).reshape(cout_total, 1), dtype=jnp.float32)
    return wm, bias


def _vmem_capacity_bytes(default=64 << 20):
    try:
        cap = getattr(pltpu.get_tpu_info(), "vmem_capacity_bytes", None)
        return int(cap) if cap else default
    except Exception:
        return default


def _pick_h_block(B, H, W, cin, cin_pad, cout_total, x_bytes, out_bytes,
                  budget_bytes):
    """Largest H-chunk fitting the VMEM budget whose lane axis (Hb*W) is a
    multiple of 128 (or the full H*W); prefer >= 4 even grid steps (keeps both
    v7x TensorCores busy with pipelining), then >= 2."""
    def cost(hb):
        L = hb * W
        return (2 * cin * L * x_bytes              # double-buffered input blocks
                + 2 * cout_total * L * out_bytes   # double-buffered output blocks
                + TAPS * cin_pad * L * 2           # bf16 im2col scratch
                + 3 * cin_pad * L * 4              # f32 roll/mask temporaries
                + cout_total * L * 4)              # f32 accumulator before store

    divisors = [h for h in range(H, 0, -1) if H % h == 0]
    valid = [h for h in divisors if (h * W) % 128 == 0 or h == H]
    fitting = [h for h in valid if cost(h) <= budget_bytes]
    if not fitting:                 # nothing fits: take the smallest valid block;
        fitting = valid[-1:]        # vmem_limit below is raised to cover it.

    def steps(h):
        return B * (H // h)

    hb = next((h for h in fitting if steps(h) >= 4 and steps(h) % 2 == 0), None)
    if hb is None:
        hb = next((h for h in fitting if steps(h) >= 2), fitting[0])
    return hb, cost(hb)


def dilated_inception_forward(x, merged_w, merged_b, *, dilation=2,
                              out_dtype=jnp.bfloat16):
    """x: (B, cin, H, W) NCHW in its native dtype (e.g. f32).
    merged_w / merged_b come from merge_params().  Output dtype defaults to
    bf16 (per perf review) -- pass out_dtype=x.dtype for exact-module dtypes."""
    B, cin, H, W = x.shape
    cout_total, kpad = merged_w.shape
    cin_pad = kpad // TAPS

    # Wrapper side: only a free trailing-dim reshape -- no cast, no pad.
    x_flat = x.reshape(B, cin, H * W)

    capacity = _vmem_capacity_bytes()
    budget = (20 << 20) if capacity <= (64 << 20) else (24 << 20)
    x_bytes = jnp.dtype(x.dtype).itemsize
    out_bytes = jnp.dtype(out_dtype).itemsize
    hb, block_cost = _pick_h_block(B, H, W, cin, cin_pad, cout_total,
                                   x_bytes, out_bytes, budget)
    L = hb * W
    if L % 128 != 0:
        warnings.warn(
            f"dilated_inception: lane width {L} is not a multiple of 128; "
            "output stores will be lane-masked (known TPU perf cliff).")

    vmem_limit = int(min(max(32 << 20, block_cost + (8 << 20)),
                         max(capacity - (4 << 20), 16 << 20)))

    kernel = functools.partial(_dilated_inception_kernel, dilation=dilation,
                               W=W, cin=cin, cin_pad=cin_pad)

    out = pl.pallas_call(
        kernel,
        grid=(B, H // hb),
        in_specs=[
            pl.BlockSpec((1, cin, L), lambda b, j: (b, 0, j)),
            pl.BlockSpec((cout_total, TAPS * cin_pad), lambda b, j: (0, 0)),
            pl.BlockSpec((cout_total, 1), lambda b, j: (0, 0)),
        ],
        out_specs=pl.BlockSpec((1, cout_total, L), lambda b, j: (b, 0, j)),
        out_shape=jax.ShapeDtypeStruct((B, cout_total, H * W), out_dtype),
        scratch_shapes=[pltpu.VMEM((TAPS * cin_pad, L), jnp.bfloat16)],
        compiler_params=pltpu.CompilerParams(
            dimension_semantics=("parallel", "parallel"),
            vmem_limit_bytes=vmem_limit),
    )(x_flat, merged_w, merged_b)

    # Trailing-dim split is free: back to NCHW (B, cout_total, H, W).
    return out.reshape(B, cout_total, H, W)


def reference_numpy(x, weights, biases, dilation=2):
    """Pure numpy (float64) replica of the PyTorch forward for verification."""
    x = np.asarray(x, np.float64)
    B, cin, H, W = x.shape
    outs = []
    for w, b, kern in zip(weights, biases, KERNEL_SET):
        w = np.asarray(w, np.float64)
        b = np.asarray(b, np.float64)
        pad = (kern - 1) * dilation
        xp = np.pad(x, ((0, 0), (0, 0), (0, 0), (pad, 0)))
        o = np.zeros((B, w.shape[0], H, W), np.float64)
        for j in range(kern):
            o += np.einsum('oc,bchw->bohw', w[:, :, j],
                           xp[:, :, :, j * dilation: j * dilation + W])
        o += b[None, :, None, None]
        outs.append(o)
    return np.concatenate(outs, axis=1)


if __name__ == "__main__":
    B, cin, H, W = 2, 4, 16, 16
    cout = 8                      # must be divisible by len(KERNEL_SET) = 4
    dilation = 2
    assert cout % len(KERNEL_SET) == 0
    cout_per = cout // len(KERNEL_SET)

    key = jax.random.PRNGKey(0)
    keys = jax.random.split(key, 1 + 2 * len(KERNEL_SET))
    x = jax.random.normal(keys[0], (B, cin, H, W), dtype=jnp.float32)

    # Deterministic PyTorch-like (uniform +/- 1/sqrt(fan_in)) parameter init.
    weights, biases = [], []
    for i, kern in enumerate(KERNEL_SET):
        bound = 1.0 / float(np.sqrt(cin * kern))
        weights.append(jax.random.uniform(keys[1 + 2 * i], (cout_per, cin, kern),
                                          jnp.float32, -bound, bound))
        biases.append(jax.random.uniform(keys[2 + 2 * i], (cout_per,),
                                         jnp.float32, -bound, bound))

    # Weight/bias merge is done once, off the per-forward path.
    merged_w, merged_b = merge_params(weights, biases, cin)

    out = dilated_inception_forward(x, merged_w, merged_b, dilation=dilation)
    out = jax.block_until_ready(out)
    assert out.shape == (B, cout, H, W), out.shape

    # Reference uses the same bf16-quantized operands the kernel sees (weights
    # and activations are cast to bf16 before the MXU, accumulation is f32);
    # the remaining difference is dominated by the bf16 output rounding.
    xq = np.asarray(x.astype(jnp.bfloat16).astype(jnp.float32))
    wq = [np.asarray(w.astype(jnp.bfloat16).astype(jnp.float32)) for w in weights]
    ref = reference_numpy(xq, wq, biases, dilation)
    out_f64 = np.asarray(out.astype(jnp.float32), np.float64)
    np.testing.assert_allclose(out_f64, ref, rtol=2e-2, atol=2e-2)
    print("KERNEL_OK")
</pallas_src>

<mosaic_0001>
module attributes {stable_mosaic.version = 11 : i64} {
  func.func @_dilated_inception_kernel(%arg0: i32, %arg1: i32, %arg2: memref<1x4x128xf32, #tpu.memory_space<vmem>>, %arg3: memref<8x112xbf16, #tpu.memory_space<vmem>>, %arg4: memref<8x1xf32, #tpu.memory_space<vmem>>, %arg5: memref<1x8x128xbf16, #tpu.memory_space<vmem>>, %arg6: memref<112x128xbf16, #tpu.memory_space<vmem>>) attributes {dimension_semantics = [#tpu.dimension_semantics<parallel>, #tpu.dimension_semantics<parallel>], iteration_bounds = array<i64: 2, 2>, scalar_prefetch = 0 : i64, scratch_operands = 1 : i64, tpu.core_type = #tpu.core_type<tc>, window_params = [{transform_indices = @transform_0, window_bounds = array<i64: 1, 4, 128>}, {pipeline_mode = #tpu.pipeline_mode<synchronous>, transform_indices = @transform_1, window_bounds = array<i64: 8, 112>}, {pipeline_mode = #tpu.pipeline_mode<synchronous>, transform_indices = @transform_2, window_bounds = array<i64: 8, 1>}, {transform_indices = @transform_3, window_bounds = array<i64: 1, 8, 128>}]} {
    %c0 = arith.constant 0 : index
    %c0_0 = arith.constant 0 : index
    %c0_1 = arith.constant 0 : index
    %0 = vector.load %arg2[%c0, %c0_0, %c0_1] : memref<1x4x128xf32, #tpu.memory_space<vmem>>, vector<1x4x128xf32>
    %1 = vector.shape_cast %0 : vector<1x4x128xf32> to vector<4x128xf32>
    %cst = arith.constant 0.000000e+00 : f32
    %2 = vector.broadcast %cst : f32 to vector<12x128xf32>
    %3 = tpu.concatenate %1, %2 in 0 : vector<4x128xf32>, vector<12x128xf32> -> vector<16x128xf32>
    %cst_2 = arith.constant 0.000000e+00 : f32
    %4 = vector.broadcast %cst_2 : f32 to vector<16x128xf32>
    %5 = tpu.iota {dimensions = array<i32: 1>} : vector<1x128xi32>
    %c16_i32 = arith.constant 16 : i32
    %c0_i32 = arith.constant 0 : i32
    %6 = arith.cmpi eq, %c16_i32, %c0_i32 : i32
    %c1_i32 = arith.constant 1 : i32
    %7 = arith.select %6, %c1_i32, %c16_i32 : i32
    %8 = vector.broadcast %7 : i32 to vector<1x128xi32>
    %9 = arith.remsi %5, %8 : vector<1x128xi32>
    %c0_i32_3 = arith.constant 0 : i32
    %10 = vector.broadcast %c0_i32_3 : i32 to vector<1x128xi32>
    %11 = arith.cmpi ne, %9, %10 : vector<1x128xi32>
    %c0_i32_4 = arith.constant 0 : i32
    %12 = vector.broadcast %c0_i32_4 : i32 to vector<1x128xi32>
    %13 = arith.cmpi slt, %9, %12 : vector<1x128xi32>
    %c0_i32_5 = arith.constant 0 : i32
    %14 = arith.cmpi slt, %7, %c0_i32_5 : i32
    %15 = vector.broadcast %14 : i1 to vector<1x128xi1>
    %16 = vector.broadcast %15 : vector<1x128xi1> to vector<1x128xi1>
    %17 = arith.xori %13, %16 : vector<1x128xi1>
    %18 = arith.andi %17, %11 : vector<1x128xi1>
    %19 = vector.broadcast %7 : i32 to vector<1x128xi32>
    %20 = arith.addi %9, %19 : vector<1x128xi32>
    %21 = arith.select %18, %20, %9 : vector<1x128xi1>, vector<1x128xi32>
    %c12_i32 = arith.constant 12 : i32
    %22 = tpu.dynamic_rotate %3 by %c12_i32 dim 1 : vector<16x128xf32>, i32 -> vector<16x128xf32>
    %c12_i32_6 = arith.constant 12 : i32
    %23 = vector.broadcast %c12_i32_6 : i32 to vector<1x128xi32>
    %24 = arith.cmpi sge, %21, %23 : vector<1x128xi32>
    %25 = vector.shape_cast %24 : vector<1x128xi1> to vector<1x128xi1>
    %26 = vector.broadcast %25 : vector<1x128xi1> to vector<16x128xi1>
    %27 = arith.select %26, %22, %4 : vector<16x128xi1>, vector<16x128xf32>
    %28 = arith.truncf %27 : vector<16x128xf32> to vector<16x128xbf16>
    %c0_7 = arith.constant 0 : index
    %c0_8 = arith.constant 0 : index
    %29 = vector.load %arg6[%c0_7, %c0_8] : memref<112x128xbf16, #tpu.memory_space<vmem>>, vector<16x128xbf16>
    tpu.vector_store %arg6[%c0_7, %c0_8], %28 {strides = array<i32>} : memref<112x128xbf16, #tpu.memory_space<vmem>>, vector<16x128xbf16>,
    %c10_i32 = arith.constant 10 : i32
    %30 = tpu.dynamic_rotate %3 by %c10_i32 dim 1 : vector<16x128xf32>, i32 -> vector<16x128xf32>
    %c10_i32_9 = arith.constant 10 : i32
    %31 = vector.broadcast %c10_i32_9 : i32 to vector<1x128xi32>
    %32 = arith.cmpi sge, %21, %31 : vector<1x128xi32>
    %33 = vector.shape_cast %32 : vector<1x128xi1> to vector<1x128xi1>
    %34 = vector.broadcast %33 : vector<1x128xi1> to vector<16x128xi1>
    %35 = arith.select %34, %30, %4 : vector<16x128xi1>, vector<16x128xf32>
    %36 = arith.truncf %35 : vector<16x128xf32> to vector<16x128xbf16>
    %c16 = arith.constant 16 : index
    %c0_10 = arith.constant 0 : index
    %37 = vector.load %arg6[%c16, %c0_10] : memref<112x128xbf16, #tpu.memory_space<vmem>>, vector<16x128xbf16>
    tpu.vector_store %arg6[%c16, %c0_10], %36 {strides = array<i32>} : memref<112x128xbf16, #tpu.memory_space<vmem>>, vector<16x128xbf16>,
    %c8_i32 = arith.constant 8 : i32
    %38 = tpu.dynamic_rotate %3 by %c8_i32 dim 1 : vector<16x128xf32>, i32 -> vector<16x128xf32>
    %c8_i32_11 = arith.constant 8 : i32
    %39 = vector.broadcast %c8_i32_11 : i32 to vector<1x128xi32>
    %40 = arith.cmpi sge, %21, %39 : vector<1x128xi32>
    %41 = vector.shape_cast %40 : vector<1x128xi1> to vector<1x128xi1>
    %42 = vector.broadcast %41 : vector<1x128xi1> to vector<16x128xi1>
    %43 = arith.select %42, %38, %4 : vector<16x128xi1>, vector<16x128xf32>
    %44 = arith.truncf %43 : vector<16x128xf32> to vector<16x128xbf16>
    %c32 = arith.constant 32 : index
    %c0_12 = arith.constant 0 : index
    %45 = vector.load %arg6[%c32, %c0_12] : memref<112x128xbf16, #tpu.memory_space<vmem>>, vector<16x128xbf16>
    tpu.vector_store %arg6[%c32, %c0_12], %44 {strides = array<i32>} : memref<112x128xbf16, #tpu.memory_space<vmem>>, vector<16x128xbf16>,
    %c6_i32 = arith.constant 6 : i32
    %46 = tpu.dynamic_rotate %3 by %c6_i32 dim 1 : vector<16x128xf32>, i32 -> vector<16x128xf32>
    %c6_i32_13 = arith.constant 6 : i32
    %47 = vector.broadcast %c6_i32_13 : i32 to vector<1x128xi32>
    %48 = arith.cmpi sge, %21, %47 : vector<1x128xi32>
    %49 = vector.shape_cast %48 : vector<1x128xi1> to vector<1x128xi1>
    %50 = vector.broadcast %49 : vector<1x128xi1> to vector<16x128xi1>
    %51 = arith.select %50, %46, %4 : vector<16x128xi1>, vector<16x128xf32>
    %52 = arith.truncf %51 : vector<16x128xf32> to vector<16x128xbf16>
    %c48 = arith.constant 48 : index
    %c0_14 = arith.constant 0 : index
    %53 = vector.load %arg6[%c48, %c0_14] : memref<112x128xbf16, #tpu.memory_space<vmem>>, vector<16x128xbf16>
    tpu.vector_store %arg6[%c48, %c0_14], %52 {strides = array<i32>} : memref<112x128xbf16, #tpu.memory_space<vmem>>, vector<16x128xbf16>,
    %c4_i32 = arith.constant 4 : i32
    %54 = tpu.dynamic_rotate %3 by %c4_i32 dim 1 : vector<16x128xf32>, i32 -> vector<16x128xf32>
    %c4_i32_15 = arith.constant 4 : i32
    %55 = vector.broadcast %c4_i32_15 : i32 to vector<1x128xi32>
    %56 = arith.cmpi sge, %21, %55 : vector<1x128xi32>
    %57 = vector.shape_cast %56 : vector<1x128xi1> to vector<1x128xi1>
    %58 = vector.broadcast %57 : vector<1x128xi1> to vector<16x128xi1>
    %59 = arith.select %58, %54, %4 : vector<16x128xi1>, vector<16x128xf32>
    %60 = arith.truncf %59 : vector<16x128xf32> to vector<16x128xbf16>
    %c64 = arith.constant 64 : index
    %c0_16 = arith.constant 0 : index
    %61 = vector.load %arg6[%c64, %c0_16] : memref<112x128xbf16, #tpu.memory_space<vmem>>, vector<16x128xbf16>
    tpu.vector_store %arg6[%c64, %c0_16], %60 {strides = array<i32>} : memref<112x128xbf16, #tpu.memory_space<vmem>>, vector<16x128xbf16>,
    %c2_i32 = arith.constant 2 : i32
    %62 = tpu.dynamic_rotate %3 by %c2_i32 dim 1 : vector<16x128xf32>, i32 -> vector<16x128xf32>
    %c2_i32_17 = arith.constant 2 : i32
    %63 = vector.broadcast %c2_i32_17 : i32 to vector<1x128xi32>
    %64 = arith.cmpi sge, %21, %63 : vector<1x128xi32>
    %65 = vector.shape_cast %64 : vector<1x128xi1> to vector<1x128xi1>
    %66 = vector.broadcast %65 : vector<1x128xi1> to vector<16x128xi1>
    %67 = arith.select %66, %62, %4 : vector<16x128xi1>, vector<16x128xf32>
    %68 = arith.truncf %67 : vector<16x128xf32> to vector<16x128xbf16>
    %c80 = arith.constant 80 : index
    %c0_18 = arith.constant 0 : index
    %69 = vector.load %arg6[%c80, %c0_18] : memref<112x128xbf16, #tpu.memory_space<vmem>>, vector<16x128xbf16>
    tpu.vector_store %arg6[%c80, %c0_18], %68 {strides = array<i32>} : memref<112x128xbf16, #tpu.memory_space<vmem>>, vector<16x128xbf16>,
    %70 = arith.truncf %3 : vector<16x128xf32> to vector<16x128xbf16>
    %c96 = arith.constant 96 : index
    %c0_19 = arith.constant 0 : index
    %71 = vector.load %arg6[%c96, %c0_19] : memref<112x128xbf16, #tpu.memory_space<vmem>>, vector<16x128xbf16>
    tpu.vector_store %arg6[%c96, %c0_19], %70 {strides = array<i32>} : memref<112x128xbf16, #tpu.memory_space<vmem>>, vector<16x128xbf16>,
    %c0_20 = arith.constant 0 : index
    %c0_21 = arith.constant 0 : index
    %72 = vector.load %arg3[%c0_20, %c0_21] : memref<8x112xbf16, #tpu.memory_space<vmem>>, vector<8x112xbf16>
    %c0_22 = arith.constant 0 : index
    %c0_23 = arith.constant 0 : index
    %73 = vector.load %arg6[%c0_22, %c0_23] : memref<112x128xbf16, #tpu.memory_space<vmem>>, vector<112x128xbf16>
    %cst_24 = arith.constant dense<0.000000e+00> : vector<8x128xf32>
    %74 = tpu.matmul %72, %73, %cst_24 {dimension_numbers = #tpu.dot_dimension_numbers<[1], [0], [0], [1], [0, 0, 1, 1], [], []>} : vector<8x112xbf16>, vector<112x128xbf16>, vector<8x128xf32> -> vector<8x128xf32>
    %c0_25 = arith.constant 0 : index
    %c0_26 = arith.constant 0 : index
    %75 = vector.load %arg4[%c0_25, %c0_26] : memref<8x1xf32, #tpu.memory_space<vmem>>, vector<8x1xf32>
    %76 = vector.broadcast %75 : vector<8x1xf32> to vector<8x128xf32>
    %77 = arith.addf %74, %76 : vector<8x128xf32>
    %78 = arith.truncf %77 : vector<8x128xf32> to vector<8x128xbf16>
    %c0_27 = arith.constant 0 : index
    %c0_28 = arith.constant 0 : index
    %c0_29 = arith.constant 0 : index
    %79 = vector.load %arg5[%c0_27, %c0_28, %c0_29] : memref<1x8x128xbf16, #tpu.memory_space<vmem>>, vector<1x8x128xbf16>
    %80 = vector.shape_cast %79 : vector<1x8x128xbf16> to vector<8x128xbf16>
    %81 = vector.shape_cast %78 : vector<8x128xbf16> to vector<1x8x128xbf16>
    tpu.vector_store %arg5[%c0_27, %c0_28, %c0_29], %81 {strides = array<i32>} : memref<1x8x128xbf16, #tpu.memory_space<vmem>>, vector<1x8x128xbf16>,
    return
  }
  func.func @transform_0(%arg0: i32, %arg1: i32) -> (i32, i32, i32) {
    %c0_i32 = arith.constant 0 : i32
    %c0_i32_0 = arith.constant 0 : i32
    return %arg0, %c0_i32, %arg1 : i32, i32, i32
  }
  func.func @transform_1(%arg0: i32, %arg1: i32) -> (i32, i32) {
    %c0_i32 = arith.constant 0 : i32
    %c0_i32_0 = arith.constant 0 : i32
    %c0_i32_1 = arith.constant 0 : i32
    return %c0_i32, %c0_i32_0 : i32, i32
  }
  func.func @transform_2(%arg0: i32, %arg1: i32) -> (i32, i32) {
    %c0_i32 = arith.constant 0 : i32
    %c0_i32_0 = arith.constant 0 : i32
    %c0_i32_1 = arith.constant 0 : i32
    return %c0_i32, %c0_i32_0 : i32, i32
  }
  func.func @transform_3(%arg0: i32, %arg1: i32) -> (i32, i32, i32) {
    %c0_i32 = arith.constant 0 : i32
    %c0_i32_0 = arith.constant 0 : i32
    return %arg0, %c0_i32, %arg1 : i32, i32, i32
  }
}

</mosaic_0001>

<bundles_post_ra>
// kernel: tpu_custom_call.1
= control target key start
LH: loop header
LB: loop body
LE: loop exit
PB: predicated region body
PF: predicated region fallthrough
CT: control target
= control target key end

     0   :  { %8 = vsyncpa [#allocation4], 0  ;;  %s1015_s0 = inlined_call_operand.hbm [shape: f32[2,4,256], index: 0, kind: input, shape index: {}]   ;;  %s1016_s1 = inlined_call_operand.vmem [shape: bf16[8,112], index: 1, kind: input, shape index: {}]   ;;  %s1017_s2 = inlined_call_operand.vmem [shape: f32[8,1], index: 2, kind: input, shape index: {}]   ;;  %s1018_s3 = inlined_call_operand.hbm [shape: bf16[2,8,256], index: 3, kind: output, shape index: {}]  }
   0x1   :  { %10 = vsyncpa [#allocation4 + $0x1], 0 }
   0x2   :  { %11 = vsyncpa [#allocation5], 0 }
   0x3   :  { %13 = vsyncpa [#allocation5 + $0x1], 0  ;;  %s795_s12 = smov 0   ;;  %s797_s13 = smov 0  }
   0x4   :  { %s799_s14 = smov 0   ;;  %s801_s15 = smov 0  }
   0x5   :  { %s803_s16 = smov 0   ;;  %s805_s17 = smov 0  }
   0x6   :  { %s807_s18 = smov 0   ;;  %s809_s19 = smov 0  }
   0x7 LB: > { %s451_s20 = sadd.s32 4294967295, %s761_s19   ;;  %s452_s21 = sadd.s32 4294967294, %s761_s19   ;;  %s761_s19 = sphi %s809_s19, %s19_s19   ;;  %s757_s18 = sphi %s807_s18, %s1035_s18   ;;  %s753_s17 = sphi %s805_s17, %s1034_s17   ;;  %s749_s16 = sphi %s803_s16, %s1033_s16   ;;  %s745_s15 = sphi %s801_s15, %s1032_s15   ;;  %s741_s14 = sphi %s799_s14, %s1031_s14   ;;  %s737_s13 = sphi %s797_s13, %s1030_s13   ;;  %s733_s12 = sphi %s795_s12, %s1029_s12  }
   0x8   : > { %s28_s22 = sadd.s32 1, %s753_s17  ;;  %s31_s23 = sadd.s32 1, %s757_s18 }
   0x9   : > { %p29_p0 = scmp.ge.s32.totalorder %s28_s22, 2  ;;  %s40_s24 = sadd.s32 1, %s741_s14 }
   0xa   : > { %p47_p1 = scmp.ne.s32.totalorder %s741_s14, %s737_s13  ;;  %p48_p2 = scmp.eq.s32.totalorder %s761_s19, 0 }
   0xb   : > { %s1037_s22 = smov (%p29_p0, %s28_s22), 0  ;;  %s1039_s23 = smov (!%p29_p0, %s31_s23), %s757_s18 }
   0xc   : > { %s36_s25 = ssub.s32 %s753_s17, %s1037_s22  ;;  %p848_p3 = por %p48_p2, %p47_p1 }
   0xd   : > { %p33_p4 = scmp.ge.s32.totalorder %s1039_s23, 2  ;;  %p53_p5 = scmp.ne.s32.totalorder %s737_s13, %s733_s12 }
   0xe   : > { %p54_p6 = scmp.eq.s32.totalorder %s451_s20, 0  ;;  %p121_p7 = scmp.eq.s32.totalorder %s451_s20, 3 }
   0xf   : > { %s1041_s23 = smov (%p33_p4, %s1039_s23), 0  ;;  %p127_p10 = scmp.eq.s32.totalorder %s452_s21, 3 }
  0x10   : > { %p856_p8 = por %p54_p6, %p53_p5  ;;  %p860_p9 = por %p121_p7, %p47_p1 }
  0x11   : > { %s35_s29 = ssub.s32 %s757_s18, %s1041_s23  ;;  %p866_p12 = por %p127_p10, %p53_p5 }
  0x12   : > { %s1022_s28 = scalar_select %p860_p9, 1, 0 }
  0x13   : > { %s37_s30 = sor.u32 %s36_s25, %s35_s29  ;;  %p526_p13 = scmp.lt.s32.totalorder %s761_s19, 4 }
  0x14   : > { %p38_p11 = scmp.eq.s32.totalorder %s37_s30, 0  ;;  %s153_s5 = sand.u32 1, %s741_s14  }
  0x15   : > { %s1023_s4 = scalar_select %p866_p12, 1, 0 }
  0x16   : > { %s873_s6 = scalar_select %p38_p11, %s741_s14, %s40_s24  }
  0x17   : > { %s455_s7 = sshll.u32 %s153_s5, 2  ;;  %s456_s8 = sshll.u32 %s757_s18, 1 }
  0x18   : > { %s162_s9 = sadd.s32 %s753_s17, %s456_s8  ;;  %s157_s10 = scalar_lea.vmem [#allocation3], %s455_s7 }
  0x19   : > { %s166_s11 = sshll.u32 %s157_s10, 4  ;;  %s457_s20 = sshll.u32 %s162_s9, 6  ;;  %s877_s11 = int_to_ptr.vmem [resolvable:$true] %s166_s11 }
  0x1a   : > { %s882_s29 = scalar_lea.hbm %s1015_s0, %s457_s20  ;;  %p886_p0 = pnand %p526_p13, %p848_p3 }
  0x1b   : > { %s154_s30 = scalar_lea.sflag [#allocation4], %s153_s5  ;;  %s633_s7 = scalar_lea.hbm %s882_s29, 64 }
  0x1c   : > { %p634_p4 = scmp.ne.s32.totalorder %s882_s29, %s633_s7  ;;  %p635_p5 = pneg %p886_p0 }
  0x1d   : > { %s638_s9 = scalar_lea.hbm %s1015_s0, 256  ;;  %p639_p3 = scmp.lt.u32.totalorder %s882_s29, %s1015_s0 }
  0x1e   : > { %p636_p6 = pnand %p635_p5, %p634_p4  ;;  %p640_p10 = scmp.lt.u32.totalorder %s638_s9, %s633_s7 }
  0x1f   : > { %p642_p13 = scmp.lt.u32.totalorder %s633_s7, %s882_s29 }
  0x20   : > { %p637_p7 = pneg %p636_p6  ;;  %p641_p11 = por %p640_p10, %p639_p3 }
  0x22   : > { %p643_p1 = por %p642_p13, %p641_p11 }
  0x24   : > { %p644_p2 = pnand %p643_p1, %p637_p7 }
  0x26   : > { %647 = shalt.err (!%p644_p2)
}
  0x27   : > { %s648_s5 = scalar_lea.vmem %s877_s11, 64  ;;  %s763_s21 = smov [#allocation3]  }
  0x28   : > { %p649_p4 = scmp.ne.s32.totalorder %s877_s11, %s648_s5  ;;  %s653_s25 = sshll.u32 %s763_s21, 4  ;;  %s654_s25 = int_to_ptr.vmem [resolvable:$false] %s653_s25 }
  0x29   : > { %s655_s26 = scalar_lea.vmem %s654_s25, 128  ;;  %p656_p9 = scmp.lt.s32.totalorder %s877_s11, %s654_s25 }
  0x2a   : > { %p651_p6 = pnand %p649_p4, %p635_p5  ;;  %p657_p3 = scmp.lt.s32.totalorder %s655_s26, %s648_s5 }
  0x2c   : > { %p652_p12 = pneg %p651_p6  ;;  %p658_p10 = por %p657_p3, %p656_p9 }
  0x2e   : > { %p659_p11 = pnand %p658_p10, %p652_p12 }
  0x30   : > { %662 = shalt.err (!%p659_p11)
}
  0x31   : > { %521 = dma.hbm_to_vmem [thread:$0]  (!%p886_p0), %s882_s29, 64, %s877_s11, %s154_s30  }
  0x32   : > { %p1025_p1 = scmp.lt.s32.totalorder %s761_s19, 5  ;;  %p1026_p2 = scmp.ge.s32.totalorder %s761_s19, 1 }
  0x34   : > { %p172_p5 = pnand %p1026_p2, %p1025_p1 }
  0x35   : > { %s922_s7 = sand.u32 (!%p172_p5), 1, %s737_s13  }
  0x36   : > { %175 = sbr.rel (%p172_p5) target bundleno = 442 (0x1ba), region = 32  ;;  %s459_s8 = sshll.u32 (!%p172_p5), %s922_s7, 2 }
  0x37   : > { %s178_s9 = scalar_lea.sflag (!%p172_p5), [#allocation4], %s922_s7  ;;  %s181_s24 = scalar_lea.vmem (!%p172_p5), [#allocation3], %s459_s8 }
  0x3d   : > { %724 = dma.done.wait (%p856_p8), %s178_s9, 64  }
  0x3e   : > { %726 = vsyncadd (%p856_p8), %s178_s9, 4294967232  ;;  %v764_v0 = vmov 0.0   ;;  %vm206_vm0 = vcmask 1043456   ;;  %v933_v1 = vld [vmem:[%s181_s24] sm:$0xf]  ;;  %s765_s11 = smov 12   ;;  %v208_v6 = vlaneseq }
  0x3f   : > { %496 = vmatprep.subr.bf16.mxu0 %v764_v0  ;;  %v207_v2 = vsel %vm206_vm0, %v933_v1, 0.0  ;;  %s766_s29 = smov 8   ;;  %s767_s30 = smov 10   ;;  %vm771_vm1 = vmmov 0   ;;  %v298_v4 = vld [vmem:[%s1017_s2] sm:$0xff]  ;;  %v772_v5 = vmov 0   ;;  %v486_v33 = vpack.c.bf16 %v764_v0, %v933_v1 }
  0x40   : > { %v602_v3 = vpack.i.bf16 %v764_v0, %v207_v2  ;;  %s768_s10 = smov 6   ;;  %s769_s27 = smov 4   ;;  %510 = vmatprep.mubr.msk.bf16.mxu0 %vm771_vm1, %v764_v0  ;;  %632 = vset.pattern.permute.xlu0 %v772_v5  ;;  %v209_v7 = vand.u32 127, %v208_v6  ;;  %vm773_vm14 = vmmov 1   ;;  %v290_v34 = vld [vmem:[%s1016_s1] sm:$0xf] }
  0x41   : > { %s770_s20 = smov 2   ;;  %vm485_vm15 = vmpackc.low %vm773_vm14, %vm206_vm0  ;;  %vm304_vm1 = vcmask 916480   ;;  %s463_s9 = sshll.u32 %s749_s16, 1 }
  0x42   : > { %603 = vrot.lane.b32.xlu0 %v602_v3, %s765_s11  ;;  %613 = vrot.lane.b32.xlu1 %v602_v3, %s766_s29  ;;  %v214_v8 = vand.u32 15, %v209_v7  ;;  %s362_s24 = sadd.s32 %s745_s15, %s463_s9  ;;  %s203_s29 = scalar_lea.vmem [#allocation6], %s459_s8 }
  0x43   : > { %s464_s11 = sshll.u32 %s362_s24, 6  ;;  %s351_s15 = scalar_lea.sflag [#allocation5], %s922_s7 }
  0x44   : > { %vm226_vm2 = vcmp.ge.s32.totalorder %v214_v8, 12  ;;  %vm237_vm4 = vcmp.ge.s32.totalorder %v214_v8, 10  ;;  %vm248_vm6 = vcmp.ge.s32.totalorder %v214_v8, 8  ;;  %vm259_vm8 = vcmp.ge.s32.totalorder %v214_v8, 6  ;;  %p1027_p9 = scmp.ne.s32.totalorder %s1022_s28, 0  ;;  %s774_s8 = smov [#allocation6]  }
  0x45   : > { %vm467_vm3 = vmpackc.low %vm226_vm2, %vm226_vm2  ;;  %vm270_vm10 = vcmp.ge.s32.totalorder %v214_v8, 4  ;;  %vm281_vm12 = vcmp.ge.s32.totalorder %v214_v8, 2  ;;  %s667_s5 = sshll.u32 %s774_s8, 4  ;;  %s668_s5 = int_to_ptr.vmem [resolvable:$false] %s667_s5 }
  0x46   : > { %608 = vrot.lane.b32.xlu0 %v602_v3, %s767_s30  ;;  %618 = vrot.lane.b32.xlu1 %v602_v3, %s768_s10  ;;  %vm470_vm5 = vmpackc.low %vm237_vm4, %vm237_vm4  ;;  %s366_s30 = sshll.u32 %s203_s29, 4  ;;  %s669_s21 = scalar_lea.vmem %s668_s5, 128  ;;  %s963_s30 = int_to_ptr.vmem [resolvable:$true] %s366_s30 }
  0x47   : > { %vm473_vm7 = vmpackc.low %vm248_vm6, %vm248_vm6  ;;  %s663_s16 = scalar_lea.vmem %s963_s30, 64  ;;  %p670_p7 = scmp.lt.s32.totalorder %s963_s30, %s668_s5 }
  0x48   : > { %vm476_vm9 = vmpackc.low %vm259_vm8, %vm259_vm8  ;;  %p664_p8 = scmp.ne.s32.totalorder %s963_s30, %s663_s16  ;;  %p671_p13 = scmp.lt.s32.totalorder %s669_s21, %s663_s16 }
  0x49   : > { %vm479_vm11 = vmpackc.low %vm270_vm10, %vm270_vm10 }
  0x4a   : > { %623 = vrot.lane.b32.xlu0 %v602_v3, %s769_s27  ;;  %628 = vrot.lane.b32.xlu1 %v602_v3, %s770_s20  ;;  %vm482_vm13 = vmpackc.low %vm281_vm12, %vm281_vm12  ;;  %s961_s20 = scalar_lea.hbm %s1018_s3, %s464_s11  ;;  %p665_p12 = pnand %p664_p8, %p1027_p9 }
  0x4b   : > { %p672_p4 = por %p671_p13, %p670_p7 }
  0x4c   : > { %p666_p0 = pneg %p665_p12 }
  0x4e   : > { %301 = vperm.xlu0 %632, %v298_v4   ;;  %p673_p6 = pnand %p672_p4, %p666_p0 }
  0xb4   : > { %v604_v9 = vpop.permute.xlu0 %603  ;;  %v614_v10 = vpop.permute.xlu1 %613 }
  0xb5   : > { %v606_v11 = vunpack.i.h.bf16 %v604_v9  ;;  %v605_v12 = vunpack.i.l.bf16 %v604_v9  ;;  %v616_v17 = vunpack.i.h.bf16 %v614_v10  ;;  %v615_v18 = vunpack.i.l.bf16 %v614_v10 }
  0xb7   : > { %v468_v13 = vpack.c.bf16 %v606_v11, %v605_v12  ;;  %v474_v21 = vpack.c.bf16 %v616_v17, %v615_v18 }
  0xb8   : > { %v609_v14 = vpop.permute.xlu0 %608  ;;  %v619_v19 = vpop.permute.xlu1 %618 }
  0xb9   : > { %v611_v15 = vunpack.i.h.bf16 %v609_v14  ;;  %v610_v16 = vunpack.i.l.bf16 %v609_v14  ;;  %497 = vmatpush3.bf16.msk.msra.mxu0 %vm467_vm3, %v468_v13  ;;  %v621_v22 = vunpack.i.h.bf16 %v619_v19  ;;  %v620_v23 = vunpack.i.l.bf16 %v619_v19 }
  0xba   : > { %498 = vmatprep.subr.bf16.mxu0 %v764_v0 }
  0xbb   : > { %v471_v20 = vpack.c.bf16 %v611_v15, %v610_v16  ;;  %v477_v25 = vpack.c.bf16 %v621_v22, %v620_v23 }
  0xbc   : > { %v624_v24 = vpop.permute.xlu0 %623  ;;  %v629_v28 = vpop.permute.xlu1 %628 }
  0xbd   : > { %499 = vmatpush3.bf16.msk.msra.mxu0 %vm470_vm5, %v471_v20  ;;  %v626_v26 = vunpack.i.h.bf16 %v624_v24  ;;  %v625_v27 = vunpack.i.l.bf16 %v624_v24  ;;  %v631_v30 = vunpack.i.h.bf16 %v629_v28  ;;  %v630_v31 = vunpack.i.l.bf16 %v629_v28 }
  0xbe   : > { %500 = vmatprep.subr.bf16.mxu0 %v764_v0 }
  0xbf   : > { %v480_v29 = vpack.c.bf16 %v626_v26, %v625_v27  ;;  %v483_v32 = vpack.c.bf16 %v631_v30, %v630_v31 }
  0xc1   : > { %501 = vmatpush3.bf16.msk.msra.mxu0 %vm473_vm7, %v474_v21 }
  0xc2   : > { %502 = vmatprep.subr.bf16.mxu0 %v764_v0 }
  0xc5   : > { %503 = vmatpush3.bf16.msk.msra.mxu0 %vm476_vm9, %v477_v25 }
  0xc6   : > { %504 = vmatprep.subr.bf16.mxu0 %v764_v0 }
  0xc9   : > { %505 = vmatpush3.bf16.msk.msra.mxu0 %vm479_vm11, %v480_v29 }
  0xca   : > { %506 = vmatprep.subr.bf16.mxu0 %v764_v0 }
  0xcd   : > { %507 = vmatpush3.bf16.msk.msra.mxu0 %vm482_vm13, %v483_v32  ;;  %v302_v35 = vpop.permute.xlu0 %301 }
  0xce   : > { %508 = vmatprep.subr.bf16.mxu0 %v764_v0 }
  0xd1   : > { %509 = vmatpush3.bf16.msk.msra.mxu0 %vm485_vm15, %v486_v33 }
  0xd4   : > { %511 = vmatmul.mubr.msk.bf16.vlgmr.msra.gmra.mrb[0].mxu0 %vm304_vm1, %v290_v34 }
 0x1a7   : > { %v342_v36 = vpop.f32.mrb[0].mxu0 }
 0x1a8   : > { %v343_v37 = vadd.f32 %v342_v36, %v302_v35  ;;  %v512_v38 = vpop.f32.mrb[1].mxu0 }
 0x1a9   : > { %v345_v39 = vpop.f32.mrb[2].mxu0 }
 0x1aa   : > { %v348_v40 = vpack.c.bf16 %v343_v37, %v343_v37  ;;  %v513_v41 = vpop.f32.mrb[3].mxu0 }
 0x1ac   : > { %349 = vst [vmem:[%s203_s29] sm:$0xf] %v348_v40 }
 0x1ad   : > { %676 = shalt.err (!%p673_p6)
}
 0x1ae   : > { %s677_s7 = scalar_lea.hbm %s961_s20, 64  ;;  %s681_s9 = scalar_lea.hbm %s1018_s3, 256 }
 0x1af   : > { %p678_p3 = scmp.ne.s32.totalorder %s961_s20, %s677_s7  ;;  %p682_p1 = scmp.lt.u32.totalorder %s961_s20, %s1018_s3 }
 0x1b0   : > { %p683_p2 = scmp.lt.u32.totalorder %s681_s9, %s677_s7  ;;  %p685_p8 = scmp.lt.u32.totalorder %s677_s7, %s961_s20 }
 0x1b1   : > { %p679_p10 = pnand %p678_p3, %p1027_p9 }
 0x1b2   : > { %p684_p5 = por %p683_p2, %p682_p1 }
 0x1b3   : > { %p680_p11 = pneg %p679_p10 }
 0x1b4   : > { %p686_p12 = por %p685_p8, %p684_p5 }
 0x1b6   : > { %p687_p0 = pnand %p686_p12, %p680_p11 }
 0x1b8   : > { %690 = shalt.err (!%p687_p0)
}
 0x1b9   : > { %516 = dma.vmem_to_hbm [thread:$0]  (%p1027_p9), %s963_s30, 64, %s961_s20, %s351_s15  }
 0x1ba PF: > { %p527_p7 = scmp.ge.s32.totalorder %s761_s19, 2  ;;  %s378_s29 = sand.u32 1, %s733_s12  }
 0x1bb   : > { %p1028_p13 = scmp.ne.s32.totalorder %s1023_s4, 0  ;;  %s379_s10 = scalar_lea.sflag [#allocation5], %s378_s29 }
 0x1bd   : > { %p523_p4 = pnand %p527_p7, %p1028_p13 }
 0x1bf   : > { %728 = dma.done.wait (!%p523_p4), %s379_s10, 64  }
 0x1c0   : > { %730 = vsyncadd (!%p523_p4), %s379_s10, 4294967232  ;;  %s19_s19 = sadd.s32 1, %s761_s19   ;;  %s1029_s12 = smov %s737_s13 }
 0x1c1   : > { %p16_p6 = scmp.ge.s32.totalorder %s19_s19, 6   ;;  %s1030_s13 = smov %s741_s14 }
 0x1c2   : > { %s1031_s14 = smov %s873_s6  ;;  %s1032_s15 = smov %s753_s17 }
 0x1c3   : > { %s1033_s16 = smov %s757_s18  ;;  %s1034_s17 = smov %s1037_s22 }
 0x1c4   : > { %s1035_s18 = smov %s1041_s23  ;;  %18 = sbr.rel (!%p16_p6) target bundleno = 7 (0x7), region = 77 }
 0x1cb   :  { %384 = vsyncpa [#allocation4], 1 }
 0x1cc   :  { %386 = vsyncpa [#allocation4 + $0x1], 1 }
 0x1cd   :  { %387 = vsyncpa [#allocation5], 1 }
 0x1ce   :  { %389 = vsyncpa [#allocation5 + $0x1], 1 }

</bundles_post_ra>
